<compile_context>
chip_gen: v7x
topology: tpu7x:2x2x1
jax: 0.10.0
libtpu: 0.0.40
codegen_flags: <defaults>
</compile_context>

<pallas_src>
import jax
import jax.numpy as jnp
from jax.experimental import pallas as pl
from jax.experimental.pallas import tpu as pltpu

EPS_MAG = 1e-6
EPS_LN = 1e-5  # PyTorch nn.LayerNorm default


def _mag_kernel(
    beta_ref,                         # (1, 1) f32 in SMEM : beta_shift
    cell_ref, d1_ref, d2_ref,         # (tm, D) activation tiles
    w_d1_ref, w_d2_ref, w_cell_ref,   # (D, 2D) fused weights, VMEM-resident
    b_d1_ref, b_d2_ref,               # (1, 2D) fused biases
    gamma_ref, ln_beta_ref,           # (1, D) LayerNorm params
    out_ref,                          # (tm, D)
):
    D = cell_ref.shape[-1]
    beta_shift = beta_ref[0, 0]

    cell = cell_ref[...].astype(jnp.float32)
    d1 = d1_ref[...]
    d2 = d2_ref[...]

    # Three fused MXU matmuls (N = 2D) replace six N = D matmuls.
    m1 = jnp.dot(d1, w_d1_ref[...], preferred_element_type=jnp.float32) + b_d1_ref[...]
    m2 = jnp.dot(d2, w_d2_ref[...], preferred_element_type=jnp.float32) + b_d2_ref[...]
    mc = jnp.dot(cell, w_cell_ref[...], preferred_element_type=jnp.float32)

    # weight_dc1 = relu(W_drugcell1(cat([drug1, cell]))), similarly for dc2.
    wdc1 = jnp.maximum(m1[:, :D] + mc[:, :D], 0.0)
    wdc2 = jnp.maximum(m2[:, :D] + mc[:, D:], 0.0)
    proj1 = m1[:, D:]                 # W_drug2cell1(drug1)
    proj2 = m2[:, D:]                 # W_drug2cell2(drug2)
    h_m = wdc1 * proj1 + wdc2 * proj2

    # Per-row gating scalar alpha.
    em_norm = jnp.sqrt(jnp.sum(cell * cell, axis=-1, keepdims=True))
    hm_norm = jnp.sqrt(jnp.sum(h_m * h_m, axis=-1, keepdims=True))
    hm_norm = jnp.where(hm_norm == 0.0, jnp.ones_like(hm_norm), hm_norm)
    thresh = em_norm / (hm_norm + EPS_MAG) * beta_shift
    alpha = jnp.minimum(thresh, 1.0)

    emb = alpha * h_m + cell

    # LayerNorm over the last dim (f32 throughout; rsqrt goes to the EUP).
    mean = jnp.mean(emb, axis=-1, keepdims=True)
    centered = emb - mean
    var = jnp.mean(centered * centered, axis=-1, keepdims=True)
    normed = centered * jax.lax.rsqrt(var + EPS_LN)
    out = normed * gamma_ref[...] + ln_beta_ref[...]

    # dropout == identity (eval mode)
    out_ref[...] = out.astype(out_ref.dtype)


def prepare_params(params):
    """One-time host-side weight prep: transpose to (in, out) and fuse along out."""
    D = params["W_drug2cell1_w"].shape[0]
    w_dc1 = params["W_drugcell1_w"]        # (D, 2D)  PyTorch layout (out, in)
    w_dc2 = params["W_drugcell2_w"]
    w_d1 = jnp.concatenate([w_dc1[:, :D].T, params["W_drug2cell1_w"].T], axis=1)   # (D, 2D)
    w_d2 = jnp.concatenate([w_dc2[:, :D].T, params["W_drug2cell2_w"].T], axis=1)   # (D, 2D)
    w_cell = jnp.concatenate([w_dc1[:, D:].T, w_dc2[:, D:].T], axis=1)             # (D, 2D)
    b_d1 = jnp.concatenate([params["W_drugcell1_b"], params["W_drug2cell1_b"]]).reshape(1, 2 * D)
    b_d2 = jnp.concatenate([params["W_drugcell2_b"], params["W_drug2cell2_b"]]).reshape(1, 2 * D)
    return {
        "w_d1": w_d1, "w_d2": w_d2, "w_cell": w_cell,
        "b_d1": b_d1, "b_d2": b_d2,
        "gamma": params["ln_gamma"].reshape(1, D),
        "ln_beta": params["ln_beta"].reshape(1, D),
    }


def mag_forward(cell, d1, d2, prep, *, beta_shift=1.0, block_rows=512):
    B, D = cell.shape
    D2 = 2 * D

    # Batch tile: multiple of 8 sublanes, capped by block_rows. Pad B up to a
    # multiple of tm so every grid step sees a full tile; padded (all-zero)
    # rows stay finite through the whole pipeline and are sliced off at the
    # end (alpha == 0, LayerNorm of zeros -> ln_beta; never NaN/Inf).
    tm = min(block_rows, B)
    tm = max(8, ((tm + 7) // 8) * 8)
    Bp = ((B + tm - 1) // tm) * tm
    if Bp != B:
        pad = ((0, Bp - B), (0, 0))
        cell_p = jnp.pad(cell, pad)
        d1_p = jnp.pad(d1, pad)
        d2_p = jnp.pad(d2, pad)
    else:
        cell_p, d1_p, d2_p = cell, d1, d2
    nb = Bp // tm

    beta_arr = jnp.full((1, 1), beta_shift, jnp.float32)

    # VMEM budget: resident weights/biases + double-buffered streamed tiles
    # + headroom for the (tm, 2D) intermediates.
    itemsize = 4
    resident = 3 * D * D2 * itemsize + 2 * D2 * itemsize + 2 * D * itemsize
    streamed = (3 + 1) * 2 * tm * D * itemsize          # 3 inputs + 1 output, 2 buffers each
    scratch = 6 * tm * D2 * itemsize                    # intermediate headroom
    vmem_limit = int(min(64 * 2**20, max(32 * 2**20, 2 * (resident + streamed + scratch))))

    act_spec = pl.BlockSpec((tm, D), lambda i: (i, 0))
    w_spec = pl.BlockSpec((D, D2), lambda i: (0, 0))
    b_spec = pl.BlockSpec((1, D2), lambda i: (0, 0))
    g_spec = pl.BlockSpec((1, D), lambda i: (0, 0))
    smem_spec = pl.BlockSpec(memory_space=pltpu.MemorySpace.SMEM)

    out = pl.pallas_call(
        _mag_kernel,
        out_shape=jax.ShapeDtypeStruct((Bp, D), cell.dtype),
        grid=(nb,),
        in_specs=[smem_spec, act_spec, act_spec, act_spec,
                  w_spec, w_spec, w_spec, b_spec, b_spec, g_spec, g_spec],
        out_specs=act_spec,
        compiler_params=pltpu.CompilerParams(
            dimension_semantics=("parallel",),
            vmem_limit_bytes=vmem_limit,
        ),
    )(beta_arr, cell_p, d1_p, d2_p,
      prep["w_d1"], prep["w_d2"], prep["w_cell"],
      prep["b_d1"], prep["b_d2"], prep["gamma"], prep["ln_beta"])

    return out[:B] if Bp != B else out


def init_params(key, cell_dim):
    D = cell_dim
    ks = jax.random.split(key, 4)

    def lin(k, out_f, in_f):
        bound = 1.0 / jnp.sqrt(in_f)
        kw, kb = jax.random.split(k)
        w = jax.random.uniform(kw, (out_f, in_f), jnp.float32, -bound, bound)
        b = jax.random.uniform(kb, (out_f,), jnp.float32, -bound, bound)
        return w, b

    w1, b1 = lin(ks[0], D, 2 * D)
    w2, b2 = lin(ks[1], D, 2 * D)
    w3, b3 = lin(ks[2], D, D)
    w4, b4 = lin(ks[3], D, D)
    return {
        "W_drugcell1_w": w1, "W_drugcell1_b": b1,
        "W_drugcell2_w": w2, "W_drugcell2_b": b2,
        "W_drug2cell1_w": w3, "W_drug2cell1_b": b3,
        "W_drug2cell2_w": w4, "W_drug2cell2_b": b4,
        "ln_gamma": jnp.ones((D,), jnp.float32),
        "ln_beta": jnp.zeros((D,), jnp.float32),
    }


def mag_reference(cell, d1, d2, params, *, beta_shift=1.0):
    """Pure-JAX reference matching the PyTorch forward (eval mode)."""
    hp = jax.lax.Precision.HIGHEST

    def linear(x, w, b):
        return jnp.dot(x, w.T, precision=hp) + b

    wdc1 = jax.nn.relu(linear(jnp.concatenate([d1, cell], -1),
                              params["W_drugcell1_w"], params["W_drugcell1_b"]))
    wdc2 = jax.nn.relu(linear(jnp.concatenate([d2, cell], -1),
                              params["W_drugcell2_w"], params["W_drugcell2_b"]))
    h_m = wdc1 * linear(d1, params["W_drug2cell1_w"], params["W_drug2cell1_b"]) \
        + wdc2 * linear(d2, params["W_drug2cell2_w"], params["W_drug2cell2_b"])
    em_norm = jnp.linalg.norm(cell, axis=-1)
    hm_norm = jnp.linalg.norm(h_m, axis=-1)
    hm_norm = jnp.where(hm_norm == 0.0, 1.0, hm_norm)
    alpha = jnp.minimum(em_norm / (hm_norm + EPS_MAG) * beta_shift, 1.0)[..., None]
    emb = alpha * h_m + cell
    mean = jnp.mean(emb, -1, keepdims=True)
    var = jnp.mean((emb - mean) ** 2, -1, keepdims=True)
    normed = (emb - mean) / jnp.sqrt(var + EPS_LN)
    return normed * params["ln_gamma"] + params["ln_beta"]


if __name__ == "__main__":
    # D = 128 keeps the output lane-dense; B = 40 with block_rows=16 exercises
    # the multi-step grid and the ragged-batch padding path (40 -> 48 rows).
    B, D = 40, 128
    key = jax.random.PRNGKey(0)
    k_cell, k_d1, k_d2, k_params = jax.random.split(key, 4)

    cell = jax.random.normal(k_cell, (B, D), jnp.float32)
    drug1 = jax.random.normal(k_d1, (B, D), jnp.float32)
    drug2 = jax.random.normal(k_d2, (B, D), jnp.float32)

    params = init_params(k_params, D)
    prep = prepare_params(params)   # one-time weight fusion / transpose

    # Multi-step grid + padding path.
    out = mag_forward(cell, drug1, drug2, prep, beta_shift=1.0, block_rows=16)
    out = jax.block_until_ready(out)

    # Single-tile path (default block_rows) must agree as well.
    out_big = jax.block_until_ready(
        mag_forward(cell, drug1, drug2, prep, beta_shift=1.0))

    ref = mag_reference(cell, drug1, drug2, params, beta_shift=1.0)
    assert out.shape == (B, D)
    assert jnp.allclose(out, ref, atol=1e-3, rtol=1e-3), "mismatch vs reference"
    assert jnp.allclose(out_big, ref, atol=1e-3, rtol=1e-3), "mismatch vs reference (big tile)"

    print("KERNEL_OK")
</pallas_src>

<mosaic_0001>
module attributes {stable_mosaic.version = 11 : i64} {
  func.func @_mag_kernel(%arg0: i32, %arg1: memref<1x1xf32, #tpu.memory_space<smem>>, %arg2: memref<16x128xf32, #tpu.memory_space<vmem>>, %arg3: memref<16x128xf32, #tpu.memory_space<vmem>>, %arg4: memref<16x128xf32, #tpu.memory_space<vmem>>, %arg5: memref<128x256xf32, #tpu.memory_space<vmem>>, %arg6: memref<128x256xf32, #tpu.memory_space<vmem>>, %arg7: memref<128x256xf32, #tpu.memory_space<vmem>>, %arg8: memref<1x256xf32, #tpu.memory_space<vmem>>, %arg9: memref<1x256xf32, #tpu.memory_space<vmem>>, %arg10: memref<1x128xf32, #tpu.memory_space<vmem>>, %arg11: memref<1x128xf32, #tpu.memory_space<vmem>>, %arg12: memref<16x128xf32, #tpu.memory_space<vmem>>) attributes {dimension_semantics = [#tpu.dimension_semantics<parallel>], iteration_bounds = array<i64: 3>, scalar_prefetch = 0 : i64, scratch_operands = 0 : i64, tpu.core_type = #tpu.core_type<tc>, window_params = [{transform_indices = @transform_0, window_bounds = array<i64: 1, 1>}, {transform_indices = @transform_1, window_bounds = array<i64: 16, 128>}, {transform_indices = @transform_2, window_bounds = array<i64: 16, 128>}, {transform_indices = @transform_3, window_bounds = array<i64: 16, 128>}, {pipeline_mode = #tpu.pipeline_mode<synchronous>, transform_indices = @transform_4, window_bounds = array<i64: 128, 256>}, {pipeline_mode = #tpu.pipeline_mode<synchronous>, transform_indices = @transform_5, window_bounds = array<i64: 128, 256>}, {pipeline_mode = #tpu.pipeline_mode<synchronous>, transform_indices = @transform_6, window_bounds = array<i64: 128, 256>}, {pipeline_mode = #tpu.pipeline_mode<synchronous>, transform_indices = @transform_7, window_bounds = array<i64: 1, 256>}, {pipeline_mode = #tpu.pipeline_mode<synchronous>, transform_indices = @transform_8, window_bounds = array<i64: 1, 256>}, {pipeline_mode = #tpu.pipeline_mode<synchronous>, transform_indices = @transform_9, window_bounds = array<i64: 1, 128>}, {pipeline_mode = #tpu.pipeline_mode<synchronous>, transform_indices = @transform_10, window_bounds = array<i64: 1, 128>}, {transform_indices = @transform_11, window_bounds = array<i64: 16, 128>}]} {
    %c0 = arith.constant 0 : index
    %c0_0 = arith.constant 0 : index
    %0 = memref.load %arg1[%c0, %c0_0] : memref<1x1xf32, #tpu.memory_space<smem>>
    %c0_1 = arith.constant 0 : index
    %c0_2 = arith.constant 0 : index
    %1 = vector.load %arg2[%c0_1, %c0_2] : memref<16x128xf32, #tpu.memory_space<vmem>>, vector<16x128xf32>
    %c0_3 = arith.constant 0 : index
    %c0_4 = arith.constant 0 : index
    %2 = vector.load %arg3[%c0_3, %c0_4] : memref<16x128xf32, #tpu.memory_space<vmem>>, vector<16x128xf32>
    %c0_5 = arith.constant 0 : index
    %c0_6 = arith.constant 0 : index
    %3 = vector.load %arg4[%c0_5, %c0_6] : memref<16x128xf32, #tpu.memory_space<vmem>>, vector<16x128xf32>
    %c0_7 = arith.constant 0 : index
    %c0_8 = arith.constant 0 : index
    %4 = vector.load %arg5[%c0_7, %c0_8] : memref<128x256xf32, #tpu.memory_space<vmem>>, vector<128x256xf32>
    %cst = arith.constant dense<0.000000e+00> : vector<16x256xf32>
    %5 = tpu.matmul %2, %4, %cst {dimension_numbers = #tpu.dot_dimension_numbers<[1], [0], [0], [1], [0, 0, 1, 1], [], []>} : vector<16x128xf32>, vector<128x256xf32>, vector<16x256xf32> -> vector<16x256xf32>
    %c0_9 = arith.constant 0 : index
    %c0_10 = arith.constant 0 : index
    %6 = vector.load %arg8[%c0_9, %c0_10] : memref<1x256xf32, #tpu.memory_space<vmem>>, vector<1x256xf32>
    %7 = vector.broadcast %6 : vector<1x256xf32> to vector<16x256xf32>
    %8 = arith.addf %5, %7 : vector<16x256xf32>
    %c0_11 = arith.constant 0 : index
    %c0_12 = arith.constant 0 : index
    %9 = vector.load %arg6[%c0_11, %c0_12] : memref<128x256xf32, #tpu.memory_space<vmem>>, vector<128x256xf32>
    %cst_13 = arith.constant dense<0.000000e+00> : vector<16x256xf32>
    %10 = tpu.matmul %3, %9, %cst_13 {dimension_numbers = #tpu.dot_dimension_numbers<[1], [0], [0], [1], [0, 0, 1, 1], [], []>} : vector<16x128xf32>, vector<128x256xf32>, vector<16x256xf32> -> vector<16x256xf32>
    %c0_14 = arith.constant 0 : index
    %c0_15 = arith.constant 0 : index
    %11 = vector.load %arg9[%c0_14, %c0_15] : memref<1x256xf32, #tpu.memory_space<vmem>>, vector<1x256xf32>
    %12 = vector.broadcast %11 : vector<1x256xf32> to vector<16x256xf32>
    %13 = arith.addf %10, %12 : vector<16x256xf32>
    %c0_16 = arith.constant 0 : index
    %c0_17 = arith.constant 0 : index
    %14 = vector.load %arg7[%c0_16, %c0_17] : memref<128x256xf32, #tpu.memory_space<vmem>>, vector<128x256xf32>
    %cst_18 = arith.constant dense<0.000000e+00> : vector<16x256xf32>
    %15 = tpu.matmul %1, %14, %cst_18 {dimension_numbers = #tpu.dot_dimension_numbers<[1], [0], [0], [1], [0, 0, 1, 1], [], []>} : vector<16x128xf32>, vector<128x256xf32>, vector<16x256xf32> -> vector<16x256xf32>
    %16 = vector.extract_strided_slice %8 {offsets = [0, 0], sizes = [16, 128], strides = [1, 1]} : vector<16x256xf32> to vector<16x128xf32>
    %17 = vector.extract_strided_slice %15 {offsets = [0, 0], sizes = [16, 128], strides = [1, 1]} : vector<16x256xf32> to vector<16x128xf32>
    %18 = arith.addf %16, %17 : vector<16x128xf32>
    %cst_19 = arith.constant 0.000000e+00 : f32
    %19 = vector.broadcast %cst_19 : f32 to vector<16x128xf32>
    %20 = arith.maximumf %18, %19 : vector<16x128xf32>
    %21 = vector.extract_strided_slice %13 {offsets = [0, 0], sizes = [16, 128], strides = [1, 1]} : vector<16x256xf32> to vector<16x128xf32>
    %22 = vector.extract_strided_slice %15 {offsets = [0, 128], sizes = [16, 128], strides = [1, 1]} : vector<16x256xf32> to vector<16x128xf32>
    %23 = arith.addf %21, %22 : vector<16x128xf32>
    %cst_20 = arith.constant 0.000000e+00 : f32
    %24 = vector.broadcast %cst_20 : f32 to vector<16x128xf32>
    %25 = arith.maximumf %23, %24 : vector<16x128xf32>
    %26 = vector.extract_strided_slice %8 {offsets = [0, 128], sizes = [16, 128], strides = [1, 1]} : vector<16x256xf32> to vector<16x128xf32>
    %27 = vector.extract_strided_slice %13 {offsets = [0, 128], sizes = [16, 128], strides = [1, 1]} : vector<16x256xf32> to vector<16x128xf32>
    %28 = arith.mulf %20, %26 : vector<16x128xf32>
    %29 = arith.mulf %25, %27 : vector<16x128xf32>
    %30 = arith.addf %28, %29 : vector<16x128xf32>
    %31 = arith.mulf %1, %1 : vector<16x128xf32>
    %cst_21 = arith.constant dense<0.000000e+00> : vector<16xf32>
    %32 = vector.multi_reduction <add>, %31, %cst_21 [1] : vector<16x128xf32> to vector<16xf32>
    %33 = vector.shape_cast %32 : vector<16xf32> to vector<16x1xf32>
    %34 = math.sqrt %33 : vector<16x1xf32>
    %35 = arith.mulf %30, %30 : vector<16x128xf32>
    %cst_22 = arith.constant dense<0.000000e+00> : vector<16xf32>
    %36 = vector.multi_reduction <add>, %35, %cst_22 [1] : vector<16x128xf32> to vector<16xf32>
    %37 = vector.shape_cast %36 : vector<16xf32> to vector<16x1xf32>
    %38 = math.sqrt %37 : vector<16x1xf32>
    %cst_23 = arith.constant 0.000000e+00 : f32
    %39 = vector.broadcast %cst_23 : f32 to vector<16x1xf32>
    %40 = arith.cmpf oeq, %38, %39 : vector<16x1xf32>
    %cst_24 = arith.constant 1.000000e+00 : f32
    %41 = vector.broadcast %cst_24 : f32 to vector<16x1xf32>
    %42 = arith.select %40, %41, %38 : vector<16x1xi1>, vector<16x1xf32>
    %cst_25 = arith.constant 9.99999997E-7 : f32
    %43 = vector.broadcast %cst_25 : f32 to vector<16x1xf32>
    %44 = arith.addf %42, %43 : vector<16x1xf32>
    %45 = arith.divf %34, %44 : vector<16x1xf32>
    %46 = vector.broadcast %0 : f32 to vector<16x1xf32>
    %47 = arith.mulf %45, %46 : vector<16x1xf32>
    %cst_26 = arith.constant 1.000000e+00 : f32
    %48 = vector.broadcast %cst_26 : f32 to vector<16x1xf32>
    %49 = arith.minimumf %47, %48 : vector<16x1xf32>
    %50 = vector.broadcast %49 : vector<16x1xf32> to vector<16x128xf32>
    %51 = arith.mulf %50, %30 : vector<16x128xf32>
    %52 = arith.addf %51, %1 : vector<16x128xf32>
    %cst_27 = arith.constant dense<0.000000e+00> : vector<16xf32>
    %53 = vector.multi_reduction <add>, %52, %cst_27 [1] : vector<16x128xf32> to vector<16xf32>
    %54 = vector.shape_cast %53 : vector<16xf32> to vector<16x1xf32>
    %cst_28 = arith.constant 1.280000e+02 : f32
    %55 = vector.broadcast %cst_28 : f32 to vector<16x1xf32>
    %56 = arith.divf %54, %55 : vector<16x1xf32>
    %57 = vector.broadcast %56 : vector<16x1xf32> to vector<16x128xf32>
    %58 = arith.subf %52, %57 : vector<16x128xf32>
    %59 = arith.mulf %58, %58 : vector<16x128xf32>
    %cst_29 = arith.constant dense<0.000000e+00> : vector<16xf32>
    %60 = vector.multi_reduction <add>, %59, %cst_29 [1] : vector<16x128xf32> to vector<16xf32>
    %61 = vector.shape_cast %60 : vector<16xf32> to vector<16x1xf32>
    %cst_30 = arith.constant 1.280000e+02 : f32
    %62 = vector.broadcast %cst_30 : f32 to vector<16x1xf32>
    %63 = arith.divf %61, %62 : vector<16x1xf32>
    %cst_31 = arith.constant 9.99999974E-6 : f32
    %64 = vector.broadcast %cst_31 : f32 to vector<16x1xf32>
    %65 = arith.addf %63, %64 : vector<16x1xf32>
    %66 = math.rsqrt %65 : vector<16x1xf32>
    %67 = vector.broadcast %66 : vector<16x1xf32> to vector<16x128xf32>
    %68 = arith.mulf %58, %67 : vector<16x128xf32>
    %c0_32 = arith.constant 0 : index
    %c0_33 = arith.constant 0 : index
    %69 = vector.load %arg10[%c0_32, %c0_33] : memref<1x128xf32, #tpu.memory_space<vmem>>, vector<1x128xf32>
    %70 = vector.broadcast %69 : vector<1x128xf32> to vector<16x128xf32>
    %71 = arith.mulf %68, %70 : vector<16x128xf32>
    %c0_34 = arith.constant 0 : index
    %c0_35 = arith.constant 0 : index
    %72 = vector.load %arg11[%c0_34, %c0_35] : memref<1x128xf32, #tpu.memory_space<vmem>>, vector<1x128xf32>
    %73 = vector.broadcast %72 : vector<1x128xf32> to vector<16x128xf32>
    %74 = arith.addf %71, %73 : vector<16x128xf32>
    %c0_36 = arith.constant 0 : index
    %c0_37 = arith.constant 0 : index
    %75 = vector.load %arg12[%c0_36, %c0_37] : memref<16x128xf32, #tpu.memory_space<vmem>>, vector<16x128xf32>
    tpu.vector_store %arg12[%c0_36, %c0_37], %74 {strides = array<i32>} : memref<16x128xf32, #tpu.memory_space<vmem>>, vector<16x128xf32>,
    return
  }
  func.func @transform_0(%arg0: i32) -> (i32, i32) {
    %c0_i32 = arith.constant 0 : i32
    %c0_i32_0 = arith.constant 0 : i32
    %c0_i32_1 = arith.constant 0 : i32
    return %c0_i32, %c0_i32_0 : i32, i32
  }
  func.func @transform_1(%arg0: i32) -> (i32, i32) {
    %c0_i32 = arith.constant 0 : i32
    %c0_i32_0 = arith.constant 0 : i32
    return %arg0, %c0_i32 : i32, i32
  }
  func.func @transform_2(%arg0: i32) -> (i32, i32) {
    %c0_i32 = arith.constant 0 : i32
    %c0_i32_0 = arith.constant 0 : i32
    return %arg0, %c0_i32 : i32, i32
  }
  func.func @transform_3(%arg0: i32) -> (i32, i32) {
    %c0_i32 = arith.constant 0 : i32
    %c0_i32_0 = arith.constant 0 : i32
    return %arg0, %c0_i32 : i32, i32
  }
  func.func @transform_4(%arg0: i32) -> (i32, i32) {
    %c0_i32 = arith.constant 0 : i32
    %c0_i32_0 = arith.constant 0 : i32
    %c0_i32_1 = arith.constant 0 : i32
    return %c0_i32, %c0_i32_0 : i32, i32
  }
  func.func @transform_5(%arg0: i32) -> (i32, i32) {
    %c0_i32 = arith.constant 0 : i32
    %c0_i32_0 = arith.constant 0 : i32
    %c0_i32_1 = arith.constant 0 : i32
    return %c0_i32, %c0_i32_0 : i32, i32
  }
  func.func @transform_6(%arg0: i32) -> (i32, i32) {
    %c0_i32 = arith.constant 0 : i32
    %c0_i32_0 = arith.constant 0 : i32
    %c0_i32_1 = arith.constant 0 : i32
    return %c0_i32, %c0_i32_0 : i32, i32
  }
  func.func @transform_7(%arg0: i32) -> (i32, i32) {
    %c0_i32 = arith.constant 0 : i32
    %c0_i32_0 = arith.constant 0 : i32
    %c0_i32_1 = arith.constant 0 : i32
    return %c0_i32, %c0_i32_0 : i32, i32
  }
  func.func @transform_8(%arg0: i32) -> (i32, i32) {
    %c0_i32 = arith.constant 0 : i32
    %c0_i32_0 = arith.constant 0 : i32
    %c0_i32_1 = arith.constant 0 : i32
    return %c0_i32, %c0_i32_0 : i32, i32
  }
  func.func @transform_9(%arg0: i32) -> (i32, i32) {
    %c0_i32 = arith.constant 0 : i32
    %c0_i32_0 = arith.constant 0 : i32
    %c0_i32_1 = arith.constant 0 : i32
    return %c0_i32, %c0_i32_0 : i32, i32
  }
  func.func @transform_10(%arg0: i32) -> (i32, i32) {
    %c0_i32 = arith.constant 0 : i32
    %c0_i32_0 = arith.constant 0 : i32
    %c0_i32_1 = arith.constant 0 : i32
    return %c0_i32, %c0_i32_0 : i32, i32
  }
  func.func @transform_11(%arg0: i32) -> (i32, i32) {
    %c0_i32 = arith.constant 0 : i32
    %c0_i32_0 = arith.constant 0 : i32
    return %arg0, %c0_i32 : i32, i32
  }
}

</mosaic_0001>

<bundles_post_ra>
// kernel: tpu_custom_call.1
= control target key start
LH: loop header
LB: loop body
LE: loop exit
PB: predicated region body
PF: predicated region fallthrough
CT: control target
= control target key end

     0   :  { %s2145_s0 = inlined_call_operand.<no memory space> [shape: f32[1,1], index: 0, kind: input, shape index: {}]   ;;  %s2146_s1 = inlined_call_operand.hbm [shape: f32[48,128], index: 1, kind: input, shape index: {}]   ;;  %s2147_s2 = inlined_call_operand.hbm [shape: f32[48,128], index: 2, kind: input, shape index: {}]   ;;  %s2148_s3 = inlined_call_operand.hbm [shape: f32[48,128], index: 3, kind: input, shape index: {}]   ;;  %s2149_s4 = inlined_call_operand.hbm [shape: f32[128,256], index: 4, kind: input, shape index: {}]   ;;  %s2150_s5 = inlined_call_operand.hbm [shape: f32[128,256], index: 5, kind: input, shape index: {}]   ;;  %s2151_s6 = inlined_call_operand.hbm [shape: f32[128,256], index: 6, kind: input, shape index: {}]   ;;  %s2152_s7 = inlined_call_operand.vmem [shape: f32[1,256], index: 7, kind: input, shape index: {}]   ;;  %s2153_s8 = inlined_call_operand.vmem [shape: f32[1,256], index: 8, kind: input, shape index: {}]   ;;  %s2154_s9 = inlined_call_operand.vmem [shape: f32[1,128], index: 9, kind: input, shape index: {}]   ;;  %s2155_s10 = inlined_call_operand.vmem [shape: f32[1,128], index: 10, kind: input, shape index: {}]   ;;  %s2156_s11 = inlined_call_operand.hbm [shape: f32[48,128], index: 11, kind: output, shape index: {}]  }
   0x1   :  { %2182 = sst [smem:[#allocation26_spill]] %s2147_s2 }
   0x2   :  { %2183 = sst [smem:[#allocation27_spill]] %s2149_s4 }
   0x3   :  { %2184 = sst [smem:[#allocation28_spill]] %s2152_s7 }
   0x4   :  { %2185 = sst [smem:[#allocation29_spill]] %s2153_s8 }
   0x5   :  { %2186 = sst [smem:[#allocation30_spill]] %s2154_s9 }
   0x6   :  { %2187 = sst [smem:[#allocation31_spill]] %s2155_s10 }
   0x7   :  { %2188 = sst [smem:[#allocation32_spill]] %s2156_s11 }
   0x8   :  { %16 = sst [smem:[#allocation2]] %s2145_s0 }
   0x9   :  { %17 = vsyncpa [#allocation4], 0 }
   0xa   :  { %19 = vsyncpa [#allocation4 + $0x1], 0 }
   0xb   :  { %20 = vsyncpa [#allocation7], 0 }
   0xc   :  { %22 = vsyncpa [#allocation7 + $0x1], 0 }
   0xd   :  { %23 = vsyncpa [#allocation10], 0 }
   0xe   :  { %24 = vsyncpa [#allocation13], 0 }
   0xf   :  { %25 = vsyncpa [#allocation5], 0 }
  0x10   :  { %27 = vsyncpa [#allocation5 + $0x1], 0  ;;  %s1751_s19 = smov 0   ;;  %s1753_s20 = smov 0  }
  0x11   :  { %s1755_s21 = smov 0   ;;  %s1757_s22 = smov 0  }
  0x12 LB: > { %2189 = sst [smem:[#allocation20_spill]] %s1660_s19  ;;  %s1772_s0 = sadd.s32 4294967295, %s1672_s22   ;;  %s1672_s22 = sphi %s1757_s22, %s2232_s22   ;;  %s1668_s21 = sphi %s1755_s21, %s2236_s21   ;;  %s1664_s20 = sphi %s1753_s20, %s2235_s20   ;;  %s1660_s19 = sphi %s1751_s19, %s2234_s19  }
  0x13   : > { %2190 = sst [smem:[#allocation21_spill]] %s1672_s22  ;;  %s1164_s23 = sadd.s32 4294967294, %s1672_s22  }
  0x14   : > { %s1776_s24 = sadd.s32 1, %s1672_s22   ;;  %s61_s25 = sadd.s32 1, %s1668_s21 }
  0x15   : > { %2191 = sst [smem:[#allocation22_spill]] %s1776_s24  ;;  %s58_s26 = ssub.s32 %s1672_s22, %s1776_s24 }
  0x16   : > { %p68_p0 = scmp.ne.s32.totalorder %s1668_s21, %s1664_s20  ;;  %p59_p1 = scmp.eq.s32.totalorder %s58_s26, 0 }
  0x17   : > { %p69_p2 = scmp.eq.s32.totalorder %s1672_s22, 0  ;;  %p74_p3 = scmp.ne.s32.totalorder %s1664_s20, %s1660_s19 }
  0x18   : > { %p2161_p4 = scmp.eq.s32.totalorder %s1772_s0, 0  ;;  %p297_p7 = scmp.eq.s32.totalorder %s1772_s0, 2 }
  0x19   : > { %s1788_s27 = scalar_select %p59_p1, %s1668_s21, %s61_s25  }
  0x1a   : > { %p1790_p5 = por %p69_p2, %p68_p0  ;;  %p1796_p6 = por %p2161_p4, %p74_p3 }
  0x1b   : > { %2192 = sst [smem:[#allocation23_spill]] %s1788_s27  ;;  %p303_p8 = scmp.eq.s32.totalorder %s1164_s23, 2 }
  0x1c   : > { %s2193_s28 = scalar_select %p1790_p5, 1, 0 }
  0x1d   : > { %s2194_s29 = scalar_select %p1796_p6, 1, 0 }
  0x1e   : > { %p1165_p9 = scmp.ge.s32.totalorder %s1672_s22, 1  ;;  %p310_p10 = scmp.lt.s32.totalorder %s1672_s22, 4 }
  0x1f   : > { %p1803_p11 = por %p297_p7, %p68_p0  ;;  %p1807_p12 = por %p303_p8, %p74_p3 }
  0x20   : > { %p1811_p13 = pnand %p1165_p9, %p310_p10  ;;  %s1674_s14 = smov [#allocation9]  }
  0x21   : > { %s2195_s30 = scalar_select %p1803_p11, 1, 0 }
  0x22   : > { %s2197_s12 = scalar_select %p1807_p12, 1, 0 }
  0x23   : > { %2196 = sst [smem:[#allocation24_spill]] %s2195_s30  ;;  %p1330_p1 = pneg %p1811_p13 }
  0x24   : > { %2198 = sst [smem:[#allocation25_spill]] %s2197_s12  ;;  %s325_s15 = sshll.u32 %s1674_s14, 4  ;;  %s326_s15 = int_to_ptr.vmem [resolvable:$true] %s325_s15 }
  0x25   : > { %s2199_s13 = scalar_select %p1811_p13, 1, 0 }
  0x26   : > { %p1819_p2 = pnand %p1330_p1, %p2161_p4  ;;  %s2160_s17 = sand.u32 1, %s1668_s21  }
  0x27   : > { %s1827_s18 = sshll.u32 %s2160_s17, 4  ;;  %s2201_s4 = sld [smem:[#allocation27_spill]] }
  0x28   : > { %s2200_s16 = scalar_select %p1819_p2, 1, 0 }
  0x29   : > { %p1837_p7 = pneg %p1819_p2 }
  0x2b   : > { %s2202_s14 = scalar_select %p1837_p7, 1, 0 }
  0x2d   : > { %s1420_s26 = scalar_lea.hbm %s2201_s4, 4096 }
  0x2e   : > { %p1421_p3 = scmp.ne.s32.totalorder %s2201_s4, %s1420_s26  ;;  %p1427_p10 = scmp.lt.u32.totalorder %s1420_s26, %s2201_s4 }
  0x30   : > { %p1423_p8 = pnand %p1837_p7, %p1421_p3 }
  0x32   : > { %p1424_p9 = pneg %p1423_p8 }
  0x34   : > { %p1429_p1 = pnand %p1427_p10, %p1424_p9 }
  0x36   : > { %1432 = shalt.err (!%p1429_p1)
}
  0x37   : > { %s1433_s23 = scalar_lea.vmem %s326_s15, 4096  ;;  %p1441_p11 = scmp.lt.s32.totalorder %s326_s15, %s326_s15 }
  0x38   : > { %p1434_p4 = scmp.ne.s32.totalorder %s326_s15, %s1433_s23  ;;  %p1442_p6 = scmp.lt.s32.totalorder %s1433_s23, %s1433_s23 }
  0x3a   : > { %p1436_p0 = pnand %p1434_p4, %p1837_p7  ;;  %p1443_p13 = por %p1442_p6, %p1441_p11 }
  0x3c   : > { %p1437_p12 = pneg %p1436_p0 }
  0x3e   : > { %p1444_p5 = pnand %p1443_p13, %p1437_p12 }
  0x40   : > { %1447 = shalt.err (!%p1444_p5)
}
  0x41   : > { %s2169_s24 = smov 256   ;;  %s2171_s27 = smov 16  }
  0x42   : > { %1333 = dma.hbm_to_vmem [thread:$0]  (!%p1819_p2), %s2201_s4, 4096, %s326_s15, [#allocation10], %s2169_s24, %s2169_s24, %s2171_s27  }
  0x43   : > { %s1857_s25 = sshll.u32 %s1672_s22, 8  ;;  %p2203_p4 = scmp.ne.s32.totalorder %s2193_s28, 0 }
  0x44   : > { %p2204_p5 = scmp.lt.s32.totalorder %s1672_s22, 3  ;;  %s398_s23 = sand.u32 1, %s1672_s22  }
  0x45   : > { %s2206_s2 = sld [smem:[#allocation26_spill]]  ;;  %s402_s15 = scalar_lea.vmem [#allocation6], %s1827_s18 }
  0x46   : > { %p1863_p6 = pnand %p2204_p5, %p2203_p4  ;;  %s409_s12 = sshll.u32 %s402_s15, 4  ;;  %s1875_s12 = int_to_ptr.vmem [resolvable:$true] %s409_s12 }
  0x47   : > { %s1877_s28 = scalar_lea.sflag [#allocation7], %s398_s23 }
  0x48   : > { %s2205_s26 = scalar_select %p1863_p6, 1, 0 }
  0x49   : > { %p1883_p12 = pneg %p1863_p6 }
  0x4b   : > { %s1872_s30 = scalar_lea.hbm %s2206_s2, %s1857_s25  ;;  %s1453_s27 = scalar_lea.hbm %s2206_s2, 768 }
  0x4c   : > { %s1448_s17 = scalar_lea.hbm %s1872_s30, 256  ;;  %p1454_p3 = scmp.lt.u32.totalorder %s1872_s30, %s2206_s2 }
  0x4d   : > { %p1449_p11 = scmp.ne.s32.totalorder %s1872_s30, %s1448_s17  ;;  %p1455_p8 = scmp.lt.u32.totalorder %s1453_s27, %s1448_s17 }
  0x4e   : > { %s2207_s24 = scalar_select %p1883_p12, 1, 0 }
  0x4f   : > { %p1451_p13 = pnand %p1883_p12, %p1449_p11  ;;  %p1456_p9 = por %p1455_p8, %p1454_p3 }
  0x50   : > { %p1457_p10 = scmp.lt.u32.totalorder %s1448_s17, %s1872_s30 }
  0x51   : > { %p1452_p0 = pneg %p1451_p13 }
  0x52   : > { %p1458_p1 = por %p1457_p10, %p1456_p9 }
  0x54   : > { %p1459_p4 = pnand %p1458_p1, %p1452_p0 }
  0x56   : > { %1462 = shalt.err (!%p1459_p4)
}
  0x57   : > { %s1463_s23 = scalar_lea.vmem %s1875_s12, 256  ;;  %s1677_s11 = smov [#allocation6]  }
  0x58   : > { %p1464_p5 = scmp.ne.s32.totalorder %s1875_s12, %s1463_s23  ;;  %s1468_s19 = sshll.u32 %s1677_s11, 4  ;;  %s1469_s19 = int_to_ptr.vmem [resolvable:$false] %s1468_s19 }
  0x59   : > { %s1470_s4 = scalar_lea.vmem %s1469_s19, 512  ;;  %p1471_p2 = scmp.lt.s32.totalorder %s1875_s12, %s1469_s19 }
  0x5a   : > { %p1466_p11 = pnand %p1464_p5, %p1883_p12  ;;  %p1472_p7 = scmp.lt.s32.totalorder %s1470_s4, %s1463_s23 }
  0x5c   : > { %p1467_p13 = pneg %p1466_p11  ;;  %p1473_p3 = por %p1472_p7, %p1471_p2 }
  0x5e   : > { %p1474_p8 = pnand %p1473_p3, %p1467_p13 }
  0x60   : > { %1477 = shalt.err (!%p1474_p8)
}
  0x61   : > { %s1678_s27 = smov 128   ;;  %s1679_s17 = smov 8  }
  0x62   : > { %1346 = dma.hbm_to_vmem [thread:$0]  (!%p1863_p6), %s1872_s30, 256, %s1875_s12, %s1877_s28, %s1678_s27, %s1678_s27, %s1679_s17  }
  0x63   : > { %s1680_s15 = smov [#allocation11]   ;;  %s1681_s19 = smov [#allocation12]  }
  0x64   : > { %s338_s11 = sshll.u32 %s1680_s15, 4  ;;  %s351_s23 = sshll.u32 %s1681_s19, 4  ;;  %s339_s11 = int_to_ptr.vmem [resolvable:$true] %s338_s11  ;;  %s352_s23 = int_to_ptr.vmem [resolvable:$true] %s351_s23 }
  0x65   : > { %s1478_s22 = scalar_lea.hbm %s2150_s5, 4096  ;;  %p2208_p7 = scmp.ne.s32.totalorder %s2202_s14, 0 }
  0x66   : > { %p1479_p2 = scmp.ne.s32.totalorder %s2150_s5, %s1478_s22  ;;  %p1485_p10 = scmp.lt.u32.totalorder %s1478_s22, %s2150_s5 }
  0x68   : > { %p1481_p0 = pnand %p1479_p2, %p2208_p7 }
  0x6a   : > { %p1482_p9 = pneg %p1481_p0 }
  0x6c   : > { %p1487_p1 = pnand %p1485_p10, %p1482_p9 }
  0x6e   : > { %1490 = shalt.err (!%p1487_p1)
}
  0x6f   : > { %s1491_s30 = scalar_lea.vmem %s339_s11, 4096  ;;  %p1499_p13 = scmp.lt.s32.totalorder %s339_s11, %s339_s11 }
  0x70   : > { %p1492_p4 = scmp.ne.s32.totalorder %s339_s11, %s1491_s30  ;;  %p1500_p3 = scmp.lt.s32.totalorder %s1491_s30, %s1491_s30 }
  0x72   : > { %p1494_p5 = pnand %p1492_p4, %p2208_p7  ;;  %p1501_p8 = por %p1500_p3, %p1499_p13 }
  0x74   : > { %p1495_p11 = pneg %p1494_p5 }
  0x76   : > { %p1502_p6 = pnand %p1501_p8, %p1495_p11 }
  0x78   : > { %1505 = shalt.err (!%p1502_p6)
}
  0x79   : > { %p2209_p2 = scmp.ne.s32.totalorder %s2200_s16, 0  ;;  %s2210_s2 = smov 16  }
  0x7a   : > { %s2211_s9 = smov 256   ;;  %s1506_s12 = scalar_lea.hbm %s2151_s6, 4096 }
  0x7b   : > { %1336 = dma.hbm_to_vmem [thread:$0]  (!%p2209_p2), %s2150_s5, 4096, %s339_s11, [#allocation10], %s2211_s9, %s2211_s9, %s2210_s2  }
  0x7c   : > { %p1507_p0 = scmp.ne.s32.totalorder %s2151_s6, %s1506_s12  ;;  %p1513_p10 = scmp.lt.u32.totalorder %s1506_s12, %s2151_s6 }
  0x7e   : > { %p1509_p6 = pnand %p1507_p0, %p2208_p7 }
  0x80   : > { %p1510_p9 = pneg %p1509_p6 }
  0x82   : > { %p1515_p1 = pnand %p1513_p10, %p1510_p9 }
  0x84   : > { %1518 = shalt.err (!%p1515_p1)
}
  0x85   : > { %s1519_s7 = scalar_lea.vmem %s352_s23, 4096  ;;  %p1527_p13 = scmp.lt.s32.totalorder %s352_s23, %s352_s23 }
  0x86   : > { %p1520_p4 = scmp.ne.s32.totalorder %s352_s23, %s1519_s7  ;;  %p1528_p3 = scmp.lt.s32.totalorder %s1519_s7, %s1519_s7 }
  0x88   : > { %p1522_p5 = pnand %p1520_p4, %p2208_p7  ;;  %p1529_p8 = por %p1528_p3, %p1527_p13 }
  0x8a   : > { %p1523_p11 = pneg %p1522_p5 }
  0x8c   : > { %p1530_p12 = pnand %p1529_p8, %p1523_p11 }
  0x8e   : > { %1533 = shalt.err (!%p1530_p12)
}
  0x8f   : > { %1339 = dma.hbm_to_vmem [thread:$0]  (!%p2209_p2), %s2151_s6, 4096, %s352_s23, [#allocation13], %s2211_s9, %s2211_s9, %s2210_s2  }
  0x90   : > { %s1956_s22 = scalar_lea.hbm %s2146_s1, %s1857_s25  ;;  %s381_s16 = scalar_lea.vmem [#allocation3], %s1827_s18 }
  0x91   : > { %s388_s12 = sshll.u32 %s381_s16, 4  ;;  %s1965_s4 = scalar_lea.hbm %s2148_s3, %s1857_s25  ;;  %s1959_s12 = int_to_ptr.vmem [resolvable:$true] %s388_s12 }
  0x92   : > { %s2212_s30 = sand.u32 1, %s1668_s21   ;;  %s1534_s2 = scalar_lea.hbm %s1956_s22, 256 }
  0x93   : > { %s1969_s23 = scalar_lea.sflag [#allocation4], %s2212_s30  ;;  %p1535_p12 = scmp.ne.s32.totalorder %s1956_s22, %s1534_s2 }
  0x94   : > { %p2213_p7 = scmp.ne.s32.totalorder %s2207_s24, 0  ;;  %s1539_s11 = scalar_lea.hbm %s2146_s1, 768 }
  0x95   : > { %p1540_p6 = scmp.lt.u32.totalorder %s1956_s22, %s2146_s1  ;;  %p1541_p9 = scmp.lt.u32.totalorder %s1539_s11, %s1534_s2 }
  0x96   : > { %p1537_p2 = pnand %p1535_p12, %p2213_p7  ;;  %p1543_p1 = scmp.lt.u32.totalorder %s1534_s2, %s1956_s22 }
  0x97   : > { %p1542_p10 = por %p1541_p9, %p1540_p6 }
  0x98   : > { %p1538_p0 = pneg %p1537_p2 }
  0x99   : > { %p1544_p4 = por %p1543_p1, %p1542_p10 }
  0x9b   : > { %p1545_p5 = pnand %p1544_p4, %p1538_p0 }
  0x9d   : > { %1548 = shalt.err (!%p1545_p5)
}
  0x9e   : > { %s1549_s25 = scalar_lea.vmem %s1959_s12, 256  ;;  %s1682_s10 = smov [#allocation3]  }
  0x9f   : > { %p1550_p11 = scmp.ne.s32.totalorder %s1959_s12, %s1549_s25  ;;  %s1554_s16 = sshll.u32 %s1682_s10, 4  ;;  %s1555_s16 = int_to_ptr.vmem [resolvable:$false] %s1554_s16 }
  0xa0   : > { %s1556_s15 = scalar_lea.vmem %s1555_s16, 512  ;;  %p1557_p8 = scmp.lt.s32.totalorder %s1959_s12, %s1555_s16 }
  0xa1   : > { %p1552_p13 = pnand %p1550_p11, %p2213_p7  ;;  %p1558_p12 = scmp.lt.s32.totalorder %s1556_s15, %s1549_s25 }
  0xa3   : > { %p1553_p3 = pneg %p1552_p13  ;;  %p1559_p2 = por %p1558_p12, %p1557_p8 }
  0xa5   : > { %p1560_p6 = pnand %p1559_p2, %p1553_p3 }
  0xa7   : > { %1563 = shalt.err (!%p1560_p6)
}
  0xa8   : > { %p2214_p0 = scmp.ne.s32.totalorder %s2205_s26, 0  ;;  %s423_s19 = scalar_lea.vmem [#allocation8], %s1827_s18 }
  0xa9   : > { %s430_s30 = sshll.u32 %s423_s19, 4  ;;  %s1564_s2 = scalar_lea.hbm %s1965_s4, 256  ;;  %s1997_s30 = int_to_ptr.vmem [resolvable:$true] %s430_s30 }
  0xaa   : > { %1343 = dma.hbm_to_vmem [thread:$0]  (!%p2214_p0), %s1956_s22, 256, %s1959_s12, %s1969_s23, %s1678_s27, %s1678_s27, %s1679_s17  }
  0xab   : > { %p1565_p9 = scmp.ne.s32.totalorder %s1965_s4, %s1564_s2  ;;  %s1569_s11 = scalar_lea.hbm %s2148_s3, 768 }
  0xac   : > { %p1570_p4 = scmp.lt.u32.totalorder %s1965_s4, %s2148_s3  ;;  %p1571_p5 = scmp.lt.u32.totalorder %s1569_s11, %s1564_s2 }
  0xad   : > { %p1567_p10 = pnand %p1565_p9, %p2213_p7  ;;  %p1573_p13 = scmp.lt.u32.totalorder %s1564_s2, %s1965_s4 }
  0xae   : > { %p1572_p11 = por %p1571_p5, %p1570_p4 }
  0xaf   : > { %p1568_p1 = pneg %p1567_p10 }
  0xb0   : > { %p1574_p3 = por %p1573_p13, %p1572_p11 }
  0xb2   : > { %p1575_p8 = pnand %p1574_p3, %p1568_p1 }
  0xb4   : > { %1578 = shalt.err (!%p1575_p8)
}
  0xb5   : > { %s1579_s18 = scalar_lea.vmem %s1997_s30, 256  ;;  %s1683_s22 = smov [#allocation8]  }
  0xb6   : > { %p1580_p12 = scmp.ne.s32.totalorder %s1997_s30, %s1579_s18  ;;  %s1584_s12 = sshll.u32 %s1683_s22, 4  ;;  %s1585_s12 = int_to_ptr.vmem [resolvable:$false] %s1584_s12 }
  0xb7   : > { %s1586_s23 = scalar_lea.vmem %s1585_s12, 512  ;;  %p1587_p9 = scmp.lt.s32.totalorder %s1997_s30, %s1585_s12 }
  0xb8   : > { %p1582_p2 = pnand %p1580_p12, %p2213_p7  ;;  %p1588_p10 = scmp.lt.s32.totalorder %s1586_s23, %s1579_s18 }
  0xba   : > { %p1583_p6 = pneg %p1582_p2  ;;  %p1589_p4 = por %p1588_p10, %p1587_p9 }
  0xbc   : > { %p1590_p5 = pnand %p1589_p4, %p1583_p6 }
  0xbe   : > { %1593 = shalt.err (!%p1590_p5)
}
  0xbf   : > { %1349 = dma.hbm_to_vmem [thread:$0]  (!%p2214_p0), %s1965_s4, 256, %s1997_s30, %s1877_s28, %s1678_s27, %s1678_s27, %s1679_s17  }
  0xc0   : > { %p2215_p7 = scmp.ne.s32.totalorder %s2199_s13, 0 }
  0xc1   : > { %s2027_s24 = sand.u32 (!%p2215_p7), 1, %s1664_s20   ;;  %p2216_p1 = scmp.ne.s32.totalorder (!%p2215_p7), %s2194_s29, 0 }
  0xc2   : > { %442 = sbr.rel (%p2215_p7) target bundleno = 1014 (0x3f6), region = 64  ;;  %s2030_s25 = sshll.u32 (!%p2215_p7), %s2027_s24, 4 }
  0xc3   : > { %s445_s26 = scalar_lea.sflag (!%p2215_p7), [#allocation4], %s2027_s24  ;;  %s448_s10 = scalar_lea.vmem (!%p2215_p7), [#allocation3], %s2030_s25 }
  0xc9   : > { %1639 = dma.done.wait (%p2216_p1), %s445_s26, 256  }
  0xca   : > { %1641 = vsyncadd (%p2216_p1), %s445_s26, 4294967040  ;;  %s453_s13 = sand.u32 1, %s1772_s0   ;;  %s457_s27 = scalar_lea.vmem [#allocation6], %s2030_s25 }
  0xcb   : > { %s454_s28 = scalar_lea.sflag [#allocation7], %s453_s13 }
  0xcc   : > { %1643 = dma.done.wait (%p2216_p1), %s454_s28, 512  }
  0xcd   : > { %1645 = vsyncadd (%p2216_p1), %s454_s28, 4294966784  ;;  %s466_s17 = scalar_lea.vmem [#allocation8], %s2030_s25  ;;  %p2217_p0 = scmp.eq.s32.totalorder %s1772_s0, 0 }
  0xcf   : > { %1647 = dma.done.wait (%p2217_p0), [#allocation10], 8192   ;;  %p2218_p11 = pmov %p2217_p0 }
  0xd0   : > { %p2219_p13 = pmov %p2217_p0 }
  0xd1   : > { %1649 = vsyncadd (%p2218_p11), [#allocation10], 4294959104 }
  0xd2   : > { %1651 = dma.done.wait (%p2219_p13), [#allocation13], 4096   ;;  %p2220_p3 = pmov %p2217_p0 }
  0xd3   : > { %v1684_v0 = vmov 0.0   ;;  %v539_v1 = vld [vmem:[#allocation9 + $0x8] sm:$0xff]  ;;  %v541_v2 = vld [vmem:[#allocation9 + $0x18] sm:$0xff]  ;;  %v538_v6 = vld [vmem:[#allocation9] sm:$0xff]  ;;  %s2221_s16 = sld [smem:[#allocation28_spill]]  ;;  %s2222_s30 = sld [smem:[#allocation29_spill]] }
  0xd4   : > { %1653 = vsyncadd (%p2220_p3), [#allocation13], 4294963200  ;;  %646 = vmatprep.mubr.f32.mxu0 %v1684_v0  ;;  %767 = vmatprep.mubr.f32.mxu1 %v1684_v0  ;;  %v660_v3 = vld [vmem:[#allocation11 + $0x8] sm:$0xff]  ;;  %v1198_v4 = vpack.c.bf16 %v541_v2, %v539_v1  ;;  %v662_v5 = vld [vmem:[#allocation11 + $0x18] sm:$0xff]  ;;  %s531_s2 = sld [smem:[#allocation2]]  ;;  %s2223_s11 = sld [smem:[#allocation30_spill]] }
  0xd5   : > { %v540_v7 = vld [vmem:[#allocation9 + $0x10] sm:$0xff]  ;;  %v1230_v8 = vpack.c.bf16 %v662_v5, %v660_v3  ;;  %v659_v10 = vld [vmem:[#allocation11] sm:$0xff]  ;;  %v543_v12 = vld [vmem:[#allocation9 + $0x28] sm:$0xff]  ;;  %s2224_s18 = sld [smem:[#allocation31_spill]]  ;;  %s2225_s22 = sld [smem:[#allocation24_spill]] }
  0xd6   : > { %v1200_v9 = vpack.c.bf16 %v540_v7, %v538_v6  ;;  %v661_v11 = vld [vmem:[#allocation11 + $0x10] sm:$0xff]  ;;  %1199 = vmatprep.subr.bf16.mxu0 %v1198_v4  ;;  %v545_v14 = vld [vmem:[#allocation9 + $0x38] sm:$0xff]  ;;  %v664_v15 = vld [vmem:[#allocation11 + $0x28] sm:$0xff]  ;;  %s1197_s12 = sshll.u32 %s1772_s0, 8  ;;  %s526_s23 = scalar_lea.vmem [#allocation14], %s2030_s25 }
  0xd7   : > { %v1232_v13 = vpack.c.bf16 %v661_v11, %v659_v10  ;;  %v666_v16 = vld [vmem:[#allocation11 + $0x38] sm:$0xff]  ;;  %1231 = vmatprep.subr.bf16.mxu1 %v1230_v8  ;;  %v1202_v17 = vpack.c.bf16 %v545_v14, %v543_v12  ;;  %v542_v19 = vld [vmem:[#allocation9 + $0x20] sm:$0xff]  ;;  %v544_v20 = vld [vmem:[#allocation9 + $0x30] sm:$0xff]  ;;  %s1019_s26 = sshll.u32 %s526_s23, 4  ;;  %s2226_s28 = sld [smem:[#allocation32_spill]]  ;;  %s2102_s26 = int_to_ptr.vmem [resolvable:$true] %s1019_s26 }
  0xd8   : > { %1201 = vmatpush1.bf16.msra.mxu0 %v1200_v9  ;;  %v1234_v18 = vpack.c.bf16 %v666_v16, %v664_v15  ;;  %v663_v21 = vld [vmem:[#allocation11 + $0x20] sm:$0xff]  ;;  %v1204_v22 = vpack.c.bf16 %v544_v20, %v542_v19  ;;  %v665_v23 = vld [vmem:[#allocation11 + $0x30] sm:$0xff]  ;;  %v547_v24 = vld [vmem:[#allocation9 + $0x48] sm:$0xff]  ;;  %s1594_s29 = scalar_lea.vmem %s2102_s26, 256  ;;  %s1685_s0 = smov [#allocation14]  }
  0xd9   : > { %1233 = vmatpush1.bf16.msra.mxu1 %v1232_v13  ;;  %v549_v25 = vld [vmem:[#allocation9 + $0x58] sm:$0xff]  ;;  %1203 = vmatprep.subr.bf16.mxu0 %v1202_v17  ;;  %v1236_v26 = vpack.c.bf16 %v665_v23, %v663_v21  ;;  %v668_v28 = vld [vmem:[#allocation11 + $0x48] sm:$0xff]  ;;  %v546_v30 = vld [vmem:[#allocation9 + $0x40] sm:$0xff]  ;;  %p1595_p8 = scmp.ne.s32.totalorder %s2102_s26, %s1594_s29  ;;  %s1598_s25 = sshll.u32 %s1685_s0, 4  ;;  %s1599_s25 = int_to_ptr.vmem [resolvable:$false] %s1598_s25 }
  0xda   : > { %1235 = vmatprep.subr.bf16.mxu1 %v1234_v18  ;;  %v1206_v27 = vpack.c.bf16 %v549_v25, %v547_v24  ;;  %v670_v29 = vld [vmem:[#allocation11 + $0x58] sm:$0xff]  ;;  %v548_v32 = vld [vmem:[#allocation9 + $0x50] sm:$0xff]  ;;  %v667_v33 = vld [vmem:[#allocation11 + $0x40] sm:$0xff]  ;;  %s1600_s4 = scalar_lea.vmem %s1599_s25, 512  ;;  %p1601_p9 = scmp.lt.s32.totalorder %s2102_s26, %s1599_s25 }
  0xdb   : > { %v1238_v31 = vpack.c.bf16 %v670_v29, %v668_v28  ;;  %v669_v34 = vld [vmem:[#allocation11 + $0x50] sm:$0xff]  ;;  %v1208_v35 = vpack.c.bf16 %v548_v32, %v546_v30  ;;  %v551_v36 = vld [vmem:[#allocation9 + $0x68] sm:$0xff]  ;;  %v553_v37 = vld [vmem:[#allocation9 + $0x78] sm:$0xff]  ;;  %p2227_p12 = scmp.ne.s32.totalorder %s2225_s22, 0  ;;  %p1602_p10 = scmp.lt.s32.totalorder %s1600_s4, %s1594_s29 }
  0xdc   : > { %1205 = vmatpush1.bf16.msra.mxu0 %v1204_v22  ;;  %v672_v38 = vld [vmem:[#allocation11 + $0x68] sm:$0xff]  ;;  %v1240_v39 = vpack.c.bf16 %v669_v34, %v667_v33  ;;  %v1210_v40 = vpack.c.bf16 %v553_v37, %v551_v36  ;;  %v674_v41 = vld [vmem:[#allocation11 + $0x78] sm:$0xff]  ;;  %v550_v42 = vld [vmem:[#allocation9 + $0x60] sm:$0xff] }
  0xdd   : > { %1237 = vmatpush1.bf16.msra.mxu1 %v1236_v26  ;;  %1207 = vmatprep.subr.bf16.mxu0 %v1206_v27  ;;  %v552_v43 = vld [vmem:[#allocation9 + $0x70] sm:$0xff]  ;;  %v1242_v44 = vpack.c.bf16 %v674_v41, %v672_v38  ;;  %v671_v45 = vld [vmem:[#allocation11 + $0x60] sm:$0xff]  ;;  %v555_v47 = vld [vmem:[#allocation9 + $0x88] sm:$0xff]  ;;  %p1596_p2 = pnand %p1595_p8, %p2227_p12  ;;  %p1603_p4 = por %p1602_p10, %p1601_p9 }
  0xde   : > { %1239 = vmatprep.subr.bf16.mxu1 %v1238_v31  ;;  %v673_v46 = vld [vmem:[#allocation11 + $0x70] sm:$0xff]  ;;  %v557_v48 = vld [vmem:[#allocation9 + $0x98] sm:$0xff]  ;;  %v676_v49 = vld [vmem:[#allocation11 + $0x88] sm:$0xff]  ;;  %v1212_v51 = vpack.c.bf16 %v552_v43, %v550_v42 }
  0xdf   : > { %v678_v50 = vld [vmem:[#allocation11 + $0x98] sm:$0xff]  ;;  %v1244_v52 = vpack.c.bf16 %v673_v46, %v671_v45  ;;  %v1214_v53 = vpack.c.bf16 %v557_v48, %v555_v47  ;;  %v554_v54 = vld [vmem:[#allocation9 + $0x80] sm:$0xff]  ;;  %v556_v55 = vld [vmem:[#allocation9 + $0x90] sm:$0xff]  ;;  %p1597_p6 = pneg %p1596_p2 }
  0xe0   : > { %1209 = vmatpush1.bf16.msra.mxu0 %v1208_v35  ;;  %v675_v56 = vld [vmem:[#allocation11 + $0x80] sm:$0xff]  ;;  %v1246_v57 = vpack.c.bf16 %v678_v50, %v676_v49  ;;  %v677_v58 = vld [vmem:[#allocation11 + $0x90] sm:$0xff]  ;;  %v559_v59 = vld [vmem:[#allocation9 + $0xa8] sm:$0xff]  ;;  %v1216_v63 = vpack.c.bf16 %v556_v55, %v554_v54 }
  0xe1   : > { %1241 = vmatpush1.bf16.msra.mxu1 %v1240_v39  ;;  %1211 = vmatprep.subr.bf16.mxu0 %v1210_v40  ;;  %v561_v60 = vld [vmem:[#allocation9 + $0xb8] sm:$0xff]  ;;  %v680_v61 = vld [vmem:[#allocation11 + $0xa8] sm:$0xff]  ;;  %v1248_v1 = vpack.c.bf16 %v677_v58, %v675_v56  ;;  %v558_v3 = vld [vmem:[#allocation9 + $0xa0] sm:$0xff]  ;;  %p1604_p5 = pnand %p1603_p4, %p1597_p6 }
  0xe2   : > { %1243 = vmatprep.subr.bf16.mxu1 %v1242_v44  ;;  %v682_v62 = vld [vmem:[#allocation11 + $0xb8] sm:$0xff]  ;;  %v1218_v2 = vpack.c.bf16 %v561_v60, %v559_v59  ;;  %v560_v4 = vld [vmem:[#allocation9 + $0xb0] sm:$0xff]  ;;  %v679_v5 = vld [vmem:[#allocation11 + $0xa0] sm:$0xff] }
  0xe3   : > { %v1250_v6 = vpack.c.bf16 %v682_v62, %v680_v61  ;;  %v681_v7 = vld [vmem:[#allocation11 + $0xb0] sm:$0xff]  ;;  %v563_v8 = vld [vmem:[#allocation9 + $0xc8] sm:$0xff]  ;;  %v565_v9 = vld [vmem:[#allocation9 + $0xd8] sm:$0xff]  ;;  %v1220_v12 = vpack.c.bf16 %v560_v4, %v558_v3 }
  0xe4   : > { %1213 = vmatpush1.bf16.msra.mxu0 %v1212_v51  ;;  %v684_v10 = vld [vmem:[#allocation11 + $0xc8] sm:$0xff]  ;;  %v686_v11 = vld [vmem:[#allocation11 + $0xd8] sm:$0xff]  ;;  %v1252_v13 = vpack.c.bf16 %v681_v7, %v679_v5  ;;  %v1222_v14 = vpack.c.bf16 %v565_v9, %v563_v8  ;;  %v562_v15 = vld [vmem:[#allocation9 + $0xc0] sm:$0xff] }
  0xe5   : > { %1245 = vmatpush1.bf16.msra.mxu1 %v1244_v52  ;;  %1215 = vmatprep.subr.bf16.mxu0 %v1214_v53  ;;  %v564_v16 = vld [vmem:[#allocation9 + $0xd0] sm:$0xff]  ;;  %v683_v17 = vld [vmem:[#allocation11 + $0xc0] sm:$0xff]  ;;  %v1254_v18 = vpack.c.bf16 %v686_v11, %v684_v10  ;;  %v567_v20 = vld [vmem:[#allocation9 + $0xe8] sm:$0xff] }
  0xe6   : > { %1247 = vmatprep.subr.bf16.mxu1 %v1246_v57  ;;  %v685_v19 = vld [vmem:[#allocation11 + $0xd0] sm:$0xff]  ;;  %v569_v21 = vld [vmem:[#allocation9 + $0xf8] sm:$0xff]  ;;  %v688_v22 = vld [vmem:[#allocation11 + $0xe8] sm:$0xff]  ;;  %v1224_v24 = vpack.c.bf16 %v564_v16, %v562_v15 }
  0xe7   : > { %v690_v23 = vld [vmem:[#allocation11 + $0xf8] sm:$0xff]  ;;  %v1256_v25 = vpack.c.bf16 %v685_v19, %v683_v17  ;;  %v1226_v26 = vpack.c.bf16 %v569_v21, %v567_v20  ;;  %v566_v27 = vld [vmem:[#allocation9 + $0xe0] sm:$0xff]  ;;  %v568_v28 = vld [vmem:[#allocation9 + $0xf0] sm:$0xff] }
  0xe8   : > { %1217 = vmatpush1.bf16.msra.mxu0 %v1216_v63  ;;  %v687_v29 = vld [vmem:[#allocation11 + $0xe0] sm:$0xff]  ;;  %v1258_v30 = vpack.c.bf16 %v690_v23, %v688_v22  ;;  %v689_v31 = vld [vmem:[#allocation11 + $0xf0] sm:$0xff]  ;;  %v781_v32 = vld [vmem:[#allocation12 + $0x8] sm:$0xff]  ;;  %v1228_v34 = vpack.c.bf16 %v568_v28, %v566_v27 }
  0xe9   : > { %1249 = vmatpush1.bf16.msra.mxu1 %v1248_v1  ;;  %1219 = vmatprep.subr.bf16.mxu0 %v1218_v2  ;;  %v783_v33 = vld [vmem:[#allocation12 + $0x18] sm:$0xff]  ;;  %v1260_v35 = vpack.c.bf16 %v689_v31, %v687_v29  ;;  %v780_v37 = vld [vmem:[#allocation12] sm:$0xff]  ;;  %v782_v38 = vld [vmem:[#allocation12 + $0x10] sm:$0xff] }
  0xea   : > { %1251 = vmatprep.subr.bf16.mxu1 %v1250_v6  ;;  %v1262_v36 = vpack.c.bf16 %v783_v33, %v781_v32  ;;  %v785_v39 = vld [vmem:[#allocation12 + $0x28] sm:$0xff]  ;;  %v787_v40 = vld [vmem:[#allocation12 + $0x38] sm:$0xff]  ;;  %v534_v41 = vld [vmem:[%s457_s27] sm:$0xff]  ;;  %v1264_v42 = vpack.c.bf16 %v782_v38, %v780_v37 }
  0xeb   : > { %v536_v43 = vld [vmem:[%s466_s17] sm:$0xff]  ;;  %v1266_v44 = vpack.c.bf16 %v787_v40, %v785_v39  ;;  %v789_v47 = vld [vmem:[#allocation12 + $0x48] sm:$0xff]  ;;  %v791_v48 = vld [vmem:[#allocation12 + $0x58] sm:$0xff] }
  0xec   : > { %1221 = vmatpush1.bf16.msra.mxu0 %v1220_v12  ;;  %v784_v45 = vld [vmem:[#allocation12 + $0x20] sm:$0xff]  ;;  %v786_v46 = vld [vmem:[#allocation12 + $0x30] sm:$0xff]  ;;  %v535_v50 = vld [vmem:[%s457_s27 + $0x8] sm:$0xff]  ;;  %v1270_v51 = vpack.c.bf16 %v791_v48, %v789_v47  ;;  %s2100_s27 = scalar_lea.hbm %s2226_s28, %s1197_s12 }
  0xed   : > { %1253 = vmatpush1.bf16.msra.mxu1 %v1252_v13  ;;  %1223 = vmatprep.subr.bf16.mxu0 %v1222_v14  ;;  %v1268_v49 = vpack.c.bf16 %v786_v46, %v784_v45  ;;  %v788_v52 = vld [vmem:[#allocation12 + $0x40] sm:$0xff]  ;;  %v790_v53 = vld [vmem:[#allocation12 + $0x50] sm:$0xff]  ;;  %v537_v54 = vld [vmem:[%s466_s17 + $0x8] sm:$0xff]  ;;  %s1006_s17 = scalar_lea.sflag [#allocation5], %s2027_s24 }
  0xee   : > { %1255 = vmatprep.subr.bf16.mxu1 %v1254_v18  ;;  %v793_v55 = vld [vmem:[#allocation12 + $0x68] sm:$0xff]  ;;  %v795_v56 = vld [vmem:[#allocation12 + $0x78] sm:$0xff]  ;;  %v1272_v57 = vpack.c.bf16 %v790_v53, %v788_v52  ;;  %v792_v59 = vld [vmem:[#allocation12 + $0x60] sm:$0xff] }
  0xef   : > { %v1274_v58 = vpack.c.bf16 %v795_v56, %v793_v55  ;;  %v794_v60 = vld [vmem:[#allocation12 + $0x70] sm:$0xff]  ;;  %v797_v61 = vld [vmem:[#allocation12 + $0x88] sm:$0xff]  ;;  %v799_v62 = vld [vmem:[#allocation12 + $0x98] sm:$0xff] }
  0xf0   : > { %1225 = vmatpush1.bf16.msra.mxu0 %v1224_v24  ;;  %v1276_v63 = vpack.c.bf16 %v794_v60, %v792_v59  ;;  %v1278_v1 = vpack.c.bf16 %v799_v62, %v797_v61  ;;  %v796_v2 = vld [vmem:[#allocation12 + $0x80] sm:$0xff]  ;;  %v798_v3 = vld [vmem:[#allocation12 + $0x90] sm:$0xff]  ;;  %v801_v4 = vld [vmem:[#allocation12 + $0xa8] sm:$0xff] }
  0xf1   : > { %1257 = vmatpush1.bf16.msra.mxu1 %v1256_v25  ;;  %1227 = vmatprep.subr.bf16.mxu0 %v1226_v26  ;;  %v803_v5 = vld [vmem:[#allocation12 + $0xb8] sm:$0xff]  ;;  %v1280_v6 = vpack.c.bf16 %v798_v3, %v796_v2  ;;  %v800_v8 = vld [vmem:[#allocation12 + $0xa0] sm:$0xff]  ;;  %v802_v9 = vld [vmem:[#allocation12 + $0xb0] sm:$0xff] }
  0xf2   : > { %1259 = vmatprep.subr.bf16.mxu1 %v1258_v30  ;;  %v1282_v7 = vpack.c.bf16 %v803_v5, %v801_v4  ;;  %v805_v10 = vld [vmem:[#allocation12 + $0xc8] sm:$0xff]  ;;  %v1284_v11 = vpack.c.bf16 %v802_v9, %v800_v8  ;;  %v804_v13 = vld [vmem:[#allocation12 + $0xc0] sm:$0xff]  ;;  %v806_v14 = vld [vmem:[#allocation12 + $0xd0] sm:$0xff] }
  0xf3   : > { %v809_v15 = vld [vmem:[#allocation12 + $0xe8] sm:$0xff]  ;;  %v811_v16 = vld [vmem:[#allocation12 + $0xf8] sm:$0xff]  ;;  %v1288_v17 = vpack.c.bf16 %v806_v14, %v804_v13  ;;  %v808_v19 = vld [vmem:[#allocation12 + $0xe0] sm:$0xff] }
  0xf4   : > { %1229 = vmatpush1.bf16.msra.mxu0 %v1228_v34  ;;  %v1290_v18 = vpack.c.bf16 %v811_v16, %v809_v15  ;;  %v810_v20 = vld [vmem:[#allocation12 + $0xf0] sm:$0xff]  ;;  %v2073_v23 = vld [vmem:[%s448_s10 + $0x8] sm:$0xff]  ;;  %v572_v34 = vlaneseq  ;;  %v570_v37 = vld [vmem:[%s2221_s16] sm:$0x3] }
  0xf5   : > { %1261 = vmatpush1.bf16.msra.mxu1 %v1260_v35  ;;  %1263 = vmatprep.subr.bf16.mxu0 %v1262_v36  ;;  %v1292_v21 = vpack.c.bf16 %v810_v20, %v808_v19  ;;  %v2069_v22 = vld [vmem:[%s448_s10] sm:$0xff]  ;;  %v904_v25 = vmul.f32 %v2073_v23, %v2073_v23 }
  0xf6   : > { %1294 = vmatprep.subr.bf16.mxu1 %v1262_v36  ;;  %v903_v24 = vmul.f32 %v2069_v22, %v2069_v22  ;;  %v573_v35 = vshrl.u32 %v572_v34, 7  ;;  %v691_v38 = vld [vmem:[%s2222_s30] sm:$0x3] }
  0xf7   : > { %647 = vmatmul.mubr.f32.vlgmr.msra.gmra.mrb[0].mxu0 %v534_v41 }
  0xf8   : > { %768 = vmatmul.mubr.f32.vlgmr.msra.gmra.mrb[0].mxu1 %v536_v43  ;;  %1265 = vmatpush1.bf16.msra.mxu0 %v1264_v42  ;;  %v574_v36 = vsub.s32 0, %v573_v35  ;;  %v578_v40 = vsub.s32 1, %v573_v35 }
  0xf9   : > { %1302 = vmatpush1.bf16.msra.mxu1 %v1264_v42  ;;  %1267 = vmatprep.subr.bf16.mxu0 %v1266_v44 }
  0xfa   : > { %1295 = vmatprep.subr.bf16.mxu1 %v1266_v44  ;;  %652 = vmatprep.mubr.f32.mxu0 %v1684_v0  ;;  %v575_v39 = vrot.slane %v570_v37, %v574_v36  ;;  %v696_v41 = vrot.slane %v691_v38, %v574_v36  ;;  %v579_v43 = vrot.slane %v570_v37, %v578_v40  ;;  %v953_v37 = vstv %s531_s2 }
  0xfb   : > { %653 = vmatmul.mubr.f32.gmra.mrb[2].mxu0 %v535_v50  ;;  %773 = vmatprep.mubr.f32.mxu1 %v1684_v0  ;;  %v700_v46 = vrot.slane %v691_v38, %v578_v40 }
  0xfc   : > { %1269 = vmatpush1.bf16.msra.mxu0 %v1268_v49  ;;  %774 = vmatmul.mubr.f32.gmra.mrb[2].mxu1 %v537_v54 }
  0xfd   : > { %1303 = vmatpush1.bf16.msra.mxu1 %v1268_v49  ;;  %1271 = vmatprep.subr.bf16.mxu0 %v1270_v51 }
  0xfe   : > { %1296 = vmatprep.subr.bf16.mxu1 %v1270_v51  ;;  %876 = vmatprep.mubr.f32.mxu0 %v1684_v0 }
  0xff   : > { %882 = vmatprep.mubr.f32.mxu1 %v1684_v0  ;;  %v807_v0 = vld [vmem:[#allocation12 + $0xd8] sm:$0xff]  ;;  %905 = vadd.xlane.f32.xlu1 %v903_v24 }
 0x100   : > { %1273 = vmatpush1.bf16.msra.mxu0 %v1272_v57  ;;  %v1286_v12 = vpack.c.bf16 %v807_v0, %v805_v10 }
 0x101   : > { %1304 = vmatpush1.bf16.msra.mxu1 %v1272_v57  ;;  %1275 = vmatprep.subr.bf16.mxu0 %v1274_v58 }
 0x102   : > { %1297 = vmatprep.subr.bf16.mxu1 %v1274_v58 }
 0x103   : > { %907 = vadd.xlane.f32.xlu1 %v904_v25 }
 0x104   : > { %1277 = vmatpush1.bf16.msra.mxu0 %v1276_v63 }
 0x105   : > { %1305 = vmatpush1.bf16.msra.mxu1 %v1276_v63  ;;  %1279 = vmatprep.subr.bf16.mxu0 %v1278_v1 }
 0x106   : > { %1298 = vmatprep.subr.bf16.mxu1 %v1278_v1 }
 0x108   : > { %1281 = vmatpush1.bf16.msra.mxu0 %v1280_v6 }
 0x109   : > { %1306 = vmatpush1.bf16.msra.mxu1 %v1280_v6  ;;  %1283 = vmatprep.subr.bf16.mxu0 %v1282_v7 }
 0x10a   : > { %1299 = vmatprep.subr.bf16.mxu1 %v1282_v7 }
 0x10c   : > { %1285 = vmatpush1.bf16.msra.mxu0 %v1284_v11 }
 0x10d   : > { %1307 = vmatpush1.bf16.msra.mxu1 %v1284_v11  ;;  %1287 = vmatprep.subr.bf16.mxu0 %v1286_v12 }
 0x10e   : > { %1300 = vmatprep.subr.bf16.mxu1 %v1286_v12 }
 0x110   : > { %1289 = vmatpush1.bf16.msra.mxu0 %v1288_v17 }
 0x111   : > { %1308 = vmatpush1.bf16.msra.mxu1 %v1288_v17  ;;  %1291 = vmatprep.subr.bf16.mxu0 %v1290_v18 }
 0x112   : > { %1301 = vmatprep.subr.bf16.mxu1 %v1290_v18 }
 0x114   : > { %1293 = vmatpush1.bf16.msra.mxu0 %v1292_v21 }
 0x115   : > { %1309 = vmatpush1.bf16.msra.mxu1 %v1292_v21 }
 0x117   : > { %877 = vmatmul.mubr.f32.vlgmr.msra.gmra.mrb[4].mxu0 %v2069_v22 }
 0x118   : > { %883 = vmatmul.mubr.f32.vlgmr.msra.gmra.mrb[4].mxu1 %v2073_v23 }
 0x18c   : > { %v906_v0 = vpop.xlane.xlu1 %905 }
 0x18d   : > { %vm911_vm6 = vcmp.eq.f32.partialorder %v906_v0, inf  ;;  %vm913_vm7 = vcmp.eq.f32.partialorder %v906_v0, 0.0 }
 0x190   : > { %v908_v12 = vpop.xlane.xlu1 %907 }
 0x191   : > { %vm918_vm8 = vcmp.eq.f32.partialorder %v908_v12, inf  ;;  %v921_v35 = vand.u32 2147483648, %v908_v12  ;;  %vm920_vm9 = vcmp.eq.f32.partialorder %v908_v12, 0.0 }
 0x1ca   : > { %v648_v26 = vpop.f32.mrb[0].mxu0 }
 0x1cb   : > { %v650_v27 = vpop.f32.mrb[1].mxu0  ;;  %v769_v28 = vpop.f32.mrb[0].mxu1  ;;  %v649_v42 = vadd.f32 %v648_v26, %v575_v39 }
 0x1cc   : > { %v771_v29 = vpop.f32.mrb[1].mxu1  ;;  %v770_v45 = vadd.f32 %v769_v28, %v696_v41  ;;  %v651_v55 = vadd.f32 %v650_v27, %v579_v43 }
 0x1cd   : > { %v772_v58 = vadd.f32 %v771_v29, %v700_v46 }
 0x1ce   : > { %v654_v30 = vpop.f32.mrb[2].mxu0 }
 0x1cf   : > { %v656_v31 = vpop.f32.mrb[3].mxu0  ;;  %v775_v32 = vpop.f32.mrb[2].mxu1  ;;  %v655_v47 = vadd.f32 %v654_v30, %v575_v39 }
 0x1d0   : > { %v777_v33 = vpop.f32.mrb[3].mxu1  ;;  %v776_v44 = vadd.f32 %v775_v32, %v696_v41  ;;  %v657_v59 = vadd.f32 %v656_v31, %v579_v43  ;;  %v914_v31 = vand.u32 2147483648, %v906_v0 }
 0x1d1   : > { %v778_v62 = vadd.f32 %v777_v33, %v700_v46 }
 0x1ea   : > { %v878_v48 = vpop.f32.mrb[4].mxu0 }
 0x1eb   : > { %v889_v49 = vadd.f32 %v878_v48, %v649_v42  ;;  %v884_v50 = vpop.f32.mrb[4].mxu1  ;;  %v880_v51 = vpop.f32.mrb[5].mxu0 }
 0x1ec   : > { %v890_v52 = vadd.f32 %v884_v50, %v655_v47  ;;  %v893_v53 = vadd.f32 %v880_v51, %v770_v45  ;;  %v886_v54 = vpop.f32.mrb[5].mxu1 }
 0x1ed   : > { %v891_v56 = vmax.f32 %v889_v49, 0.0  ;;  %v894_v57 = vadd.f32 %v886_v54, %v776_v44 }
 0x1ee   : > { %v892_v60 = vmax.f32 %v890_v52, 0.0  ;;  %v895_v61 = vmax.f32 %v893_v53, 0.0 }
 0x1ef   : > { %v897_v63 = vmul.f32 %v891_v56, %v651_v55  ;;  %v896_v1 = vmax.f32 %v894_v57, 0.0 }
 0x1f0   : > { %v898_v2 = vmul.f32 %v892_v60, %v657_v59  ;;  %v899_v3 = vmul.f32 %v895_v61, %v772_v58 }
 0x1f1   : > { %v900_v4 = vmul.f32 %v896_v1, %v778_v62  ;;  %v1187_v1 = vld [vmem:[%s2223_s11] ss:$0 sm:$0xff] }
 0x1f2   : > { %v901_v5 = vadd.f32 %v899_v3, %v897_v63  ;;  %v1188_v3 = vld [vmem:[%s2224_s18] ss:$0 sm:$0xff] }
 0x1f3   : > { %v902_v6 = vadd.f32 %v900_v4, %v898_v2 }
 0x1f4   : > { %v923_v7 = vmul.f32 %v901_v5, %v901_v5 }
 0x1f5   : > { %v924_v8 = vmul.f32 %v902_v6, %v902_v6 }
 0x1f6   : > { %925 = vadd.xlane.f32.xlu0 %v923_v7 }
 0x1fa   : > { %927 = vadd.xlane.f32.xlu0 %v924_v8 }
 0x283   : > { %v926_v9 = vpop.xlane.xlu0 %925 }
 0x284   : > { %1404 = vrsqrt.f32 %v926_v9  ;;  %vm931_vm0 = vcmp.eq.f32.partialorder %v926_v9, inf  ;;  %v934_v14 = vand.u32 2147483648, %v926_v9  ;;  %vm933_vm1 = vcmp.eq.f32.partialorder %v926_v9, 0.0 }
 0x287   : > { %v928_v10 = vpop.xlane.xlu0 %927 }
 0x288   : > { %1406 = vrsqrt.f32 %v928_v10  ;;  %vm938_vm3 = vcmp.eq.f32.partialorder %v928_v10, inf  ;;  %v941_v20 = vand.u32 2147483648, %v928_v10  ;;  %vm940_vm4 = vcmp.eq.f32.partialorder %v928_v10, 0.0 }
 0x289   : > { %1408 = vrsqrt.f32 %v906_v0 }
 0x28a   : > { %1410 = vrsqrt.f32 %v908_v12 }
 0x28e   : > { %v1405_v11 = vpop.eup %1404 }
 0x28f   : > { %v930_v13 = vmul.f32 %v1405_v11, %v926_v9 }
 0x291   : > { %v932_v15 = vsel %vm931_vm0, %v926_v9, %v930_v13 }
 0x292   : > { %v1407_v16 = vpop.eup %1406  ;;  %v935_v17 = vsel %vm933_vm1, %v934_v14, %v932_v15 }
 0x293   : > { %vm943_vm2 = vcmp.eq.f32.partialorder %v935_v17, 0.0  ;;  %v937_v18 = vmul.f32 %v1407_v16, %v928_v10  ;;  %v1409_v26 = vpop.eup %1408 }
 0x294   : > { %v945_v19 = vsel %vm943_vm2, 1.0, %v935_v17  ;;  %v910_v29 = vmul.f32 %v1409_v26, %v906_v0  ;;  %v1411_v30 = vpop.eup %1410 }
 0x295   : > { %v947_v21 = vadd.f32 1e-06, %v945_v19  ;;  %v939_v24 = vsel %vm938_vm3, %v928_v10, %v937_v18  ;;  %v917_v32 = vmul.f32 %v1411_v30, %v908_v12 }
 0x296   : > { %v942_v25 = vsel %vm940_vm4, %v941_v20, %v939_v24  ;;  %v912_v33 = vsel %vm911_vm6, %v906_v0, %v910_v29 }
 0x297   : > { %1412 = vrcp.f32 %v947_v21  ;;  %vm944_vm5 = vcmp.eq.f32.partialorder %v942_v25, 0.0  ;;  %v915_v36 = vsel %vm913_vm7, %v914_v31, %v912_v33  ;;  %v919_v39 = vsel %vm918_vm8, %v908_v12, %v917_v32 }
 0x298   : > { %v946_v27 = vsel %vm944_vm5, 1.0, %v942_v25  ;;  %v922_v42 = vsel %vm920_vm9, %v921_v35, %v919_v39 }
 0x299   : > { %v948_v28 = vadd.f32 1e-06, %v946_v27 }
 0x29b   : > { %1414 = vrcp.f32 %v948_v28 }
 0x2a1   : > { %v1413_v34 = vpop.eup %1412 }
 0x2a2   : > { %v950_v38 = vmul.f32 %v1413_v34, %v915_v36 }
 0x2a4   : > { %v954_v40 = vmul.f32 %v953_v37, %v950_v38 }
 0x2a5   : > { %v1415_v41 = vpop.eup %1414 }
 0x2a6   : > { %v956_v43 = vmin.f32 %v954_v40, 1.0  ;;  %v952_v44 = vmul.f32 %v1415_v41, %v922_v42 }
 0x2a8   : > { %v958_v45 = vmul.f32 %v956_v43, %v901_v5  ;;  %v955_v46 = vmul.f32 %v953_v37, %v952_v44 }
 0x2aa   : > { %v960_v47 = vadd.f32 %v958_v45, %v2069_v22  ;;  %v957_v48 = vmin.f32 %v955_v46, 1.0 }
 0x2ac   : > { %962 = vadd.xlane.f32.xlu0 %v960_v47  ;;  %v959_v49 = vmul.f32 %v957_v48, %v902_v6 }
 0x2ae   : > { %v961_v50 = vadd.f32 %v959_v49, %v2073_v23 }
 0x2b0   : > { %964 = vadd.xlane.f32.xlu1 %v961_v50 }
 0x339   : > { %v963_v51 = vpop.xlane.xlu0 %962 }
 0x33a   : > { %v967_v52 = vmul.f32 0.0078125, %v963_v51 }
 0x33c   : > { %v969_v53 = vsub.f32 %v960_v47, %v967_v52 }
 0x33d   : > { %v965_v54 = vpop.xlane.xlu1 %964 }
 0x33e   : > { %v968_v55 = vmul.f32 0.0078125, %v965_v54  ;;  %v971_v56 = vmul.f32 %v969_v53, %v969_v53 }
 0x340   : > { %v970_v57 = vsub.f32 %v961_v50, %v968_v55  ;;  %973 = vadd.xlane.f32.xlu0 %v971_v56 }
 0x342   : > { %v972_v58 = vmul.f32 %v970_v57, %v970_v57 }
 0x344   : > { %975 = vadd.xlane.f32.xlu1 %v972_v58 }
 0x3cd   : > { %v974_v59 = vpop.xlane.xlu0 %973 }
 0x3ce   : > { %v977_v60 = vmul.f32 0.0078125, %v974_v59 }
 0x3d0   : > { %v979_v22 = vadd.f32 1e-05, %v977_v60 }
 0x3d1   : > { %v976_v61 = vpop.xlane.xlu1 %975 }
 0x3d2   : > { %1416 = vrsqrt.f32 %v979_v22  ;;  %v978_v62 = vmul.f32 0.0078125, %v976_v61 }
 0x3d4   : > { %v980_v23 = vadd.f32 1e-05, %v978_v62 }
 0x3d6   : > { %1418 = vrsqrt.f32 %v980_v23 }
 0x3dc   : > { %v1417_v63 = vpop.eup %1416 }
 0x3dd   : > { %v983_v2 = vmul.f32 %v1417_v63, %v969_v53 }
 0x3df   : > { %v992_v4 = vmul.f32 %v1187_v1, %v983_v2 }
 0x3e0   : > { %v1419_v5 = vpop.eup %1418 }
 0x3e1   : > { %v1001_v6 = vadd.f32 %v1188_v3, %v992_v4  ;;  %v984_v7 = vmul.f32 %v1419_v5, %v970_v57 }
 0x3e3   : > { %v993_v8 = vmul.f32 %v1187_v1, %v984_v7  ;;  %1003 = vst [vmem:[%s526_s23] sm:$0xff] %v1001_v6 }
 0x3e5   : > { %v1002_v9 = vadd.f32 %v1188_v3, %v993_v8 }
 0x3e7   : > { %1004 = vst [vmem:[%s526_s23 + $0x8] sm:$0xff] %v1002_v9 }
 0x3e8   : > { %1607 = shalt.err (!%p1604_p5)
}
 0x3e9   : > { %s1608_s16 = scalar_lea.hbm %s2100_s27, 256  ;;  %s1612_s30 = scalar_lea.hbm %s2226_s28, 768 }
 0x3ea   : > { %p1609_p7 = scmp.ne.s32.totalorder %s2100_s27, %s1608_s16  ;;  %p1613_p11 = scmp.lt.u32.totalorder %s2100_s27, %s2226_s28 }
 0x3eb   : > { %p1614_p13 = scmp.lt.u32.totalorder %s1612_s30, %s1608_s16  ;;  %p1616_p8 = scmp.lt.u32.totalorder %s1608_s16, %s2100_s27 }
 0x3ec   : > { %p1610_p1 = pnand %p1609_p7, %p2227_p12 }
 0x3ed   : > { %p1615_p3 = por %p1614_p13, %p1613_p11 }
 0x3ee   : > { %p1611_p0 = pneg %p1610_p1 }
 0x3ef   : > { %p1617_p2 = por %p1616_p8, %p1615_p3 }
 0x3f1   : > { %p1618_p6 = pnand %p1617_p2, %p1611_p0 }
 0x3f3   : > { %1621 = shalt.err (!%p1618_p6)
}
 0x3f4   : > { %s1686_s7 = smov 128   ;;  %s1687_s11 = smov 8  }
 0x3f5   : > { %1328 = dma.vmem_to_hbm [thread:$0]  (%p2227_p12), %s2102_s26, 256, %s2100_s27, %s1006_s17, %s1686_s7, %s1686_s7, %s1687_s11  }
 0x3f6 PF: > { %s2228_s8 = sld [smem:[#allocation21_spill]]  ;;  %s2229_s14 = sld [smem:[#allocation20_spill]] }
 0x3f7   : > { %s2230_s18 = sld [smem:[#allocation25_spill]] }
 0x3fc   : > { %p1361_p9 = scmp.ge.s32.totalorder %s2228_s8, 2  ;;  %s1034_s12 = sand.u32 1, %s2229_s14  }
 0x3fd   : > { %p2231_p10 = scmp.ne.s32.totalorder %s2230_s18, 0  ;;  %s1035_s23 = scalar_lea.sflag [#allocation5], %s1034_s12 }
 0x3ff   : > { %p1351_p4 = pnand %p1361_p9, %p2231_p10 }
 0x401   : > { %1655 = dma.done.wait (!%p1351_p4), %s1035_s23, 256  }
 0x402   : > { %1657 = vsyncadd (!%p1351_p4), %s1035_s23, 4294967040  ;;  %s2232_s22 = sld [smem:[#allocation22_spill]]  ;;  %s2233_s10 = sld [smem:[#allocation23_spill]] }
 0x403   : > { %s2234_s19 = smov %s1664_s20  ;;  %s2235_s20 = smov %s1668_s21 }
 0x408   : > { %p30_p5 = scmp.ge.s32.totalorder %s2232_s22, 5   ;;  %s2236_s21 = smov %s2233_s10 }
 0x40a   :  { %32 = sbr.rel (!%p30_p5) target bundleno = 18 (0x12), region = 145 }
 0x411   :  { %1040 = vsyncpa [#allocation4], 1 }
 0x412   :  { %1042 = vsyncpa [#allocation4 + $0x1], 1 }
 0x413   :  { %1043 = vsyncpa [#allocation7], 1 }
 0x414   :  { %1045 = vsyncpa [#allocation7 + $0x1], 1 }
 0x415   :  { %1046 = vsyncpa [#allocation10], 1 }
 0x416   :  { %1047 = vsyncpa [#allocation13], 1 }
 0x417   :  { %1048 = vsyncpa [#allocation5], 1 }
 0x418   :  { %1050 = vsyncpa [#allocation5 + $0x1], 1 }

</bundles_post_ra>
